<compile_context>
chip_gen: v6e
topology: v6e:2x2x1
jax: 0.10.0
libtpu: 0.0.40
codegen_flags: <defaults>
</compile_context>

<pallas_src>
import math
from functools import partial

import jax
import jax.numpy as jnp
from jax.experimental import pallas as pl
from jax.experimental.pallas import tpu as pltpu


def _rows_kernel(pos_ref, invf_ref, phase_ref, out_ref):
    # pos_ref:   (TR, 1)  one position per output row
    # invf_ref:  (1, H)   f32, invf[j] = inv_freq[j // 2]
    # phase_ref: (1, H)   f32, 0 on even lanes, pi/2 on odd lanes
    # out_ref:   (TR, H)
    pos = pos_ref[...].astype(jnp.float32)
    angles = pos * invf_ref[...] + phase_ref[...]
    out_ref[...] = jnp.sin(angles).astype(out_ref.dtype)


def _packed_rows_kernel(pos_ref, sel_ref, invf_ref, phase_ref, out_ref):
    # Lane-dense variant for H < 128: G = 128 // H positions per 128-lane row.
    # pos_ref:   (TR, Gp)  positions, Gp = max(G, 8) (extra columns are zero)
    # sel_ref:   (Gp, 128) f32 one-hot: sel[g, j] = 1 iff j // H == g
    # invf_ref:  (1, 128)  f32 inv_freq pattern tiled G times
    # phase_ref: (1, 128)  f32 phase pattern tiled G times
    # out_ref:   (TR, 128)
    pos = pos_ref[...].astype(jnp.float32)
    # Expand each position across its H-lane segment on the (idle) MXU.
    # HIGHEST precision keeps the f32 positions exact through the 0/1 matmul.
    pos_exp = jax.lax.dot_general(
        pos, sel_ref[...],
        dimension_numbers=(((1,), (0,)), ((), ())),
        precision=jax.lax.Precision.HIGHEST,
        preferred_element_type=jnp.float32)          # (TR, 128)
    angles = pos_exp * invf_ref[...] + phase_ref[...]
    out_ref[...] = jnp.sin(angles).astype(out_ref.dtype)


def _choose_row_tile(rows, lane_width, out_itemsize, *,
                     target_bytes=2 << 20, vmem_budget=8 << 20):
    """Byte-sized row tile: ~target_bytes of output per block, VMEM-bounded,
    dtype-aware sublane step, and >=2 grid steps whenever that is possible."""
    step = {4: 8, 2: 16, 1: 32}.get(int(out_itemsize), 8)
    if rows <= step:
        return rows                                  # single full-extent block
    lane_padded = ((lane_width + 127) // 128) * 128
    out_row = lane_padded * out_itemsize             # bytes per out row (VMEM-padded)
    # double-buffered out block + lane-padded f32 pos block (the pos block pads
    # its narrow lane axis to 128 in VMEM, so count it explicitly).
    per_row_vmem = 2 * (out_row + 128 * 4)
    tr = min(max(target_bytes // out_row, 1), max(vmem_budget // per_row_vmem, 1))
    tr = max(step, (tr // step) * step)
    tr = min(tr, (rows // step) * step)
    if tr * 2 > rows and rows >= 2 * step:           # guarantee >=2 parallel steps (v7x: 2 TCs)
        tr = max(step, ((rows // 2) // step) * step)
    return tr


@partial(jax.jit, static_argnums=(2,), static_argnames=("out_dtype", "target_block_bytes"))
def rel_positional_embedding(pos_seq, inv_freq, hidden_size, *,
                             out_dtype=None, target_block_bytes=2 << 20):
    """JAX/Pallas equivalent of RelPositionalEmbedding.forward.

    out_dtype: dtype emitted by the kernel store (default: pos_seq.dtype).
    Math is always done in f32 regardless of out_dtype.
    """
    assert hidden_size % 2 == 0, "hidden_size must be even (sin/cos interleave)"

    has_batch = pos_seq.ndim == 2
    if not has_batch:
        pos_seq = pos_seq[None, ...]
    B, N = pos_seq.shape
    H = hidden_size
    out_dtype = jnp.dtype(pos_seq.dtype if out_dtype is None else out_dtype)

    rows = B * N
    pos_flat = pos_seq.reshape(rows)

    # invf[j] = inv_freq[j // 2]; phase[j] = (j % 2) * pi/2  (both f32).
    invf = jnp.repeat(inv_freq.astype(jnp.float32), 2)                       # (H,)
    phase = (jnp.arange(H) % 2).astype(jnp.float32) * (math.pi / 2.0)        # (H,)

    packed = (H < 128) and (128 % H == 0) and (rows % (128 // H) == 0)

    if packed:
        # Lane-dense path: pack G = 128 // H positions per 128-lane output row.
        G = 128 // H
        Gp = max(G, 8)
        rows2 = rows // G
        pos2 = pos_flat.reshape(rows2, G)
        if Gp != G:
            pos2 = jnp.pad(pos2, ((0, 0), (0, Gp - G)))
        sel = (jnp.arange(128)[None, :] // H ==
               jnp.arange(Gp)[:, None]).astype(jnp.float32)                  # (Gp, 128)
        invf_row = jnp.tile(invf, G)[None, :]                                # (1, 128)
        phase_row = jnp.tile(phase, G)[None, :]                              # (1, 128)

        TR = _choose_row_tile(rows2, 128, out_dtype.itemsize,
                              target_bytes=target_block_bytes)
        grid = (pl.cdiv(rows2, TR),)

        out = pl.pallas_call(
            _packed_rows_kernel,
            out_shape=jax.ShapeDtypeStruct((rows2, 128), out_dtype),
            grid=grid,
            in_specs=[
                pl.BlockSpec((TR, Gp), lambda i: (i, 0)),     # packed positions
                pl.BlockSpec((Gp, 128), lambda i: (0, 0)),    # one-hot expander
                pl.BlockSpec((1, 128), lambda i: (0, 0)),     # tiled inv_freq
                pl.BlockSpec((1, 128), lambda i: (0, 0)),     # tiled phase
            ],
            out_specs=pl.BlockSpec((TR, 128), lambda i: (i, 0)),
            compiler_params=pltpu.CompilerParams(
                dimension_semantics=("parallel",)),
        )(pos2, sel, invf_row, phase_row)
        out = out.reshape(B, N, H)                    # metadata-only (contiguous)
    else:
        # Generic row path (used for H % 128 == 0, e.g. the module default 384,
        # and as the fallback for ragged / odd H).
        pos_col = pos_flat[:, None]                                          # (rows, 1)
        invf_row = invf[None, :]                                             # (1, H)
        phase_row = phase[None, :]                                           # (1, H)

        TR = _choose_row_tile(rows, H, out_dtype.itemsize,
                              target_bytes=target_block_bytes)
        grid = (pl.cdiv(rows, TR),)

        out = pl.pallas_call(
            _rows_kernel,
            out_shape=jax.ShapeDtypeStruct((rows, H), out_dtype),
            grid=grid,
            in_specs=[
                pl.BlockSpec((TR, 1), lambda i: (i, 0)),
                pl.BlockSpec((1, H), lambda i: (0, 0)),
                pl.BlockSpec((1, H), lambda i: (0, 0)),
            ],
            out_specs=pl.BlockSpec((TR, H), lambda i: (i, 0)),
            compiler_params=pltpu.CompilerParams(
                dimension_semantics=("parallel",)),
        )(pos_col, invf_row, phase_row)
        out = out.reshape(B, N, H)                    # metadata-only (contiguous)

    return out if has_batch else out[0]


def reference(pos_seq, inv_freq, hidden_size):
    """Pure-JAX reference matching the PyTorch semantics."""
    squeeze = pos_seq.ndim == 1
    if squeeze:
        pos_seq = pos_seq[None, ...]
    ang = (pos_seq[..., None].astype(jnp.float32)
           * inv_freq[None, None, :].astype(jnp.float32))
    sin, cos = jnp.sin(ang), jnp.cos(ang)
    emb = jnp.stack([sin, cos], axis=-1).reshape(
        pos_seq.shape[0], pos_seq.shape[1], hidden_size).astype(pos_seq.dtype)
    return emb[0] if squeeze else emb


if __name__ == "__main__":
    hidden_size = 32
    B, N = 2, 8

    # Deterministic parameter init (same formula as the PyTorch __init__).
    inv_freq = 1.0 / (10000.0 ** (jnp.arange(0.0, hidden_size, 2.0) / hidden_size))

    key = jax.random.PRNGKey(0)
    pos_seq = jax.random.uniform(
        key, (B, N), dtype=jnp.float32, minval=-16.0, maxval=16.0)

    # Main path (packed / lane-dense since H=32).
    out = jax.block_until_ready(rel_positional_embedding(pos_seq, inv_freq, hidden_size))
    ref = reference(pos_seq, inv_freq, hidden_size)
    assert out.shape == (B, N, hidden_size)
    assert out.dtype == pos_seq.dtype
    assert jnp.allclose(out, ref, atol=1e-5, rtol=1e-5)

    # No-batch (1-D pos_seq) path.
    out1d = jax.block_until_ready(rel_positional_embedding(pos_seq[0], inv_freq, hidden_size))
    assert out1d.shape == (N, hidden_size)
    assert jnp.allclose(out1d, ref[0], atol=1e-5, rtol=1e-5)

    # Multi-tile packed path (tiny block bytes to force several grid steps).
    pos_b = jax.random.uniform(jax.random.PRNGKey(1), (2, 32), dtype=jnp.float32,
                               minval=-16.0, maxval=16.0)
    out_b = jax.block_until_ready(
        rel_positional_embedding(pos_b, inv_freq, hidden_size, target_block_bytes=2048))
    assert jnp.allclose(out_b, reference(pos_b, inv_freq, hidden_size), atol=1e-5, rtol=1e-5)

    # Ragged rows + generic (rows, H) fallback (rows not divisible by 128//H).
    pos_c = jax.random.uniform(jax.random.PRNGKey(2), (1, 13), dtype=jnp.float32,
                               minval=-16.0, maxval=16.0)
    out_c = jax.block_until_ready(
        rel_positional_embedding(pos_c, inv_freq, hidden_size, target_block_bytes=2048))
    assert jnp.allclose(out_c, reference(pos_c, inv_freq, hidden_size), atol=1e-5, rtol=1e-5)

    # Lane-dense H (row path, H multiple of 128) + bf16 consumer dtype.
    H4 = 128
    inv_freq4 = 1.0 / (10000.0 ** (jnp.arange(0.0, H4, 2.0) / H4))
    pos_d = jax.random.uniform(jax.random.PRNGKey(3), (1, 16), dtype=jnp.float32,
                               minval=-16.0, maxval=16.0)
    ref_d = reference(pos_d, inv_freq4, H4)
    out_d = jax.block_until_ready(rel_positional_embedding(pos_d, inv_freq4, H4))
    assert jnp.allclose(out_d, ref_d, atol=1e-5, rtol=1e-5)
    out_d_bf16 = jax.block_until_ready(
        rel_positional_embedding(pos_d, inv_freq4, H4, out_dtype=jnp.bfloat16))
    assert out_d_bf16.dtype == jnp.bfloat16
    assert jnp.allclose(out_d_bf16.astype(jnp.float32), ref_d, atol=2e-2, rtol=2e-2)

    print("KERNEL_OK")
</pallas_src>

<mosaic_0001>
module attributes {stable_mosaic.version = 11 : i64} {
  func.func @_packed_rows_kernel(%arg0: i32, %arg1: memref<4x8xf32, #tpu.memory_space<vmem>>, %arg2: memref<8x128xf32, #tpu.memory_space<vmem>>, %arg3: memref<1x128xf32, #tpu.memory_space<vmem>>, %arg4: memref<1x128xf32, #tpu.memory_space<vmem>>, %arg5: memref<4x128xf32, #tpu.memory_space<vmem>>) attributes {dimension_semantics = [#tpu.dimension_semantics<parallel>], iteration_bounds = array<i64: 1>, scalar_prefetch = 0 : i64, scratch_operands = 0 : i64, tpu.core_type = #tpu.core_type<tc>, window_params = [{transform_indices = @transform_0, window_bounds = array<i64: 4, 8>}, {pipeline_mode = #tpu.pipeline_mode<synchronous>, transform_indices = @transform_1, window_bounds = array<i64: 8, 128>}, {pipeline_mode = #tpu.pipeline_mode<synchronous>, transform_indices = @transform_2, window_bounds = array<i64: 1, 128>}, {pipeline_mode = #tpu.pipeline_mode<synchronous>, transform_indices = @transform_3, window_bounds = array<i64: 1, 128>}, {transform_indices = @transform_4, window_bounds = array<i64: 4, 128>}]} {
    %c0 = arith.constant 0 : index
    %c0_0 = arith.constant 0 : index
    %0 = vector.load %arg1[%c0, %c0_0] : memref<4x8xf32, #tpu.memory_space<vmem>>, vector<4x8xf32>
    %c0_1 = arith.constant 0 : index
    %c0_2 = arith.constant 0 : index
    %1 = vector.load %arg2[%c0_1, %c0_2] : memref<8x128xf32, #tpu.memory_space<vmem>>, vector<8x128xf32>
    %cst = arith.constant dense<0.000000e+00> : vector<4x128xf32>
    %2 = tpu.matmul %0, %1, %cst {dimension_numbers = #tpu.dot_dimension_numbers<[1], [0], [0], [1], [0, 0, 1, 1], [], []>, precision = #tpu.contract_precision<fp32>} : vector<4x8xf32>, vector<8x128xf32>, vector<4x128xf32> -> vector<4x128xf32>
    %c0_3 = arith.constant 0 : index
    %c0_4 = arith.constant 0 : index
    %3 = vector.load %arg3[%c0_3, %c0_4] : memref<1x128xf32, #tpu.memory_space<vmem>>, vector<1x128xf32>
    %4 = vector.broadcast %3 : vector<1x128xf32> to vector<4x128xf32>
    %5 = arith.mulf %2, %4 : vector<4x128xf32>
    %c0_5 = arith.constant 0 : index
    %c0_6 = arith.constant 0 : index
    %6 = vector.load %arg4[%c0_5, %c0_6] : memref<1x128xf32, #tpu.memory_space<vmem>>, vector<1x128xf32>
    %7 = vector.broadcast %6 : vector<1x128xf32> to vector<4x128xf32>
    %8 = arith.addf %5, %7 : vector<4x128xf32>
    %9 = math.sin %8 : vector<4x128xf32>
    %c0_7 = arith.constant 0 : index
    %c0_8 = arith.constant 0 : index
    %10 = vector.load %arg5[%c0_7, %c0_8] : memref<4x128xf32, #tpu.memory_space<vmem>>, vector<4x128xf32>
    tpu.vector_store %arg5[%c0_7, %c0_8], %9 {strides = array<i32>} : memref<4x128xf32, #tpu.memory_space<vmem>>, vector<4x128xf32>,
    return
  }
  func.func @transform_0(%arg0: i32) -> (i32, i32) {
    %c0_i32 = arith.constant 0 : i32
    %c0_i32_0 = arith.constant 0 : i32
    return %arg0, %c0_i32 : i32, i32
  }
  func.func @transform_1(%arg0: i32) -> (i32, i32) {
    %c0_i32 = arith.constant 0 : i32
    %c0_i32_0 = arith.constant 0 : i32
    %c0_i32_1 = arith.constant 0 : i32
    return %c0_i32, %c0_i32_0 : i32, i32
  }
  func.func @transform_2(%arg0: i32) -> (i32, i32) {
    %c0_i32 = arith.constant 0 : i32
    %c0_i32_0 = arith.constant 0 : i32
    %c0_i32_1 = arith.constant 0 : i32
    return %c0_i32, %c0_i32_0 : i32, i32
  }
  func.func @transform_3(%arg0: i32) -> (i32, i32) {
    %c0_i32 = arith.constant 0 : i32
    %c0_i32_0 = arith.constant 0 : i32
    %c0_i32_1 = arith.constant 0 : i32
    return %c0_i32, %c0_i32_0 : i32, i32
  }
  func.func @transform_4(%arg0: i32) -> (i32, i32) {
    %c0_i32 = arith.constant 0 : i32
    %c0_i32_0 = arith.constant 0 : i32
    return %arg0, %c0_i32 : i32, i32
  }
}

</mosaic_0001>

<bundles_post_ra>
// kernel: tile.12
= control target key start
LH: loop header
LB: loop body
LE: loop exit
PB: predicated region body
PF: predicated region fallthrough
CT: control target
= control target key end

     0   :  { %vm8_vm0 = vcmask 261120   ;;  %s40_s8 = smov 32   ;;  %s41_s9 = smov 64   ;;  %vm14_vm1 = vcmask 1048320   ;;  %vm20_vm2 = vcmask 785920   ;;  %vm26_vm3 = vcmask 523520   ;;  %s58_s0 = inlined_call_operand.vmem [shape: f32[4,32], index: 0, kind: input, shape index: {}]   ;;  %s59_s1 = inlined_call_operand.vmem [shape: f32[1,128], index: 1, kind: output, shape index: {}]  }
   0x1   :  { %v5_v0 = vld [vmem:[%s58_s0] sm:$0xf]  ;;  %s39_s0 = smov 96  }
   0x2   :  { %6 = vst [vmem:[#allocation1] sm:$0xf] %v5_v0 }
   0x9   :  { %v11_v1 = vld [vmem:[#allocation1 + $0x3] sm:$0x1]   ;;  %v23_v2 = vld [vmem:[#allocation1 + $0x1] sm:$0x1]   ;;  %v7_v3 = vld [vmem:[#allocation1] sm:$0x1]  }
   0xa   :  { %12 = vrot.lane.b32.xlu0 %v11_v1, %s39_s0  ;;  %24 = vrot.lane.b32.xlu1 %v23_v2, %s40_s8  ;;  %v17_v4 = vld [vmem:[#allocation1 + $0x2] sm:$0x1]   ;;  %9 = vst.msk [vmem:[#allocation0] sm:$0x1] %vm8_vm0, %v7_v3  }
   0xe   :  { %18 = vrot.lane.b32.xlu0 %v17_v4, %s41_s9 }
  0x7c   :  { %v13_v5 = vpop.permute.xlu0 %12   ;;  %v25_v6 = vpop.permute.xlu1 %24  }
  0x7d   :  { %15 = vst.msk [vmem:[#allocation0] sm:$0x1] %vm14_vm1, %v13_v5  }
  0x80   :  { %v19_v7 = vpop.permute.xlu0 %18  }
  0x81   :  { %21 = vst.msk [vmem:[#allocation0] sm:$0x1] %vm20_vm2, %v19_v7  }
  0x82   :  { %27 = vst.msk [vmem:[#allocation0] sm:$0x1] %vm26_vm3, %v25_v6  }
  0x89   :  { %v32_v8 = vld [vmem:[#allocation0] sm:$0x1] }
  0x8a   :  { %35 = vst [vmem:[%s59_s1] sm:$0x1] %v32_v8 }

// kernel: tile.11
= control target key start
LH: loop header
LB: loop body
LE: loop exit
PB: predicated region body
PF: predicated region fallthrough
CT: control target
= control target key end

     0   :  { %s22_s0 = inlined_call_operand.vmem [shape: f32[32], index: 0, kind: input, shape index: {}]   ;;  %s23_s1 = inlined_call_operand.vmem [shape: f32[4,32], index: 1, kind: output, shape index: {}]  }
   0x1   :  { %v4_v0 = vld [vmem:[%s22_s0] ss:$0 sm:$0xff] }
   0x2   :  { %5 = vst [vmem:[%s23_s1] sm:$0xf] %v4_v0 }

// kernel: tile.10
= control target key start
LH: loop header
LB: loop body
LE: loop exit
PB: predicated region body
PF: predicated region fallthrough
CT: control target
= control target key end

     0   :  { %s133_s10 = smov 30   ;;  %s134_s11 = smov 26   ;;  %vm3_vm0 = vcmask 15360   ;;  %vm9_vm1 = vcmask 261360   ;;  %vm15_vm2 = vcmask 244960   ;;  %vm21_vm3 = vcmask 228560   ;;  %s209_s0 = inlined_call_operand.vmem [shape: f32[16,2], index: 0, kind: input, shape index: {}]   ;;  %s210_s1 = inlined_call_operand.vmem [shape: f32[32], index: 1, kind: output, shape index: {}]  }
   0x1   :  { %v103_v0 = vld [vmem:[%s209_s0 + $0xf] sm:$0x1]   ;;  %v105_v1 = vld [vmem:[%s209_s0 + $0xd] sm:$0x1]   ;;  %v104_v2 = vld [vmem:[%s209_s0 + $0xe] sm:$0x1]  }
   0x2   :  { %7 = vrot.lane.b32.xlu0 %v103_v0, %s133_s10  ;;  %19 = vrot.lane.b32.xlu1 %v105_v1, %s134_s11  ;;  %v106_v3 = vld [vmem:[%s209_s0 + $0xc] sm:$0x1]   ;;  %s135_s16 = smov 28   ;;  %s136_s17 = smov 24   ;;  %v107_v4 = vld [vmem:[%s209_s0 + $0xb] sm:$0x1]  }
   0x3   :  { %v108_v5 = vld [vmem:[%s209_s0 + $0xa] sm:$0x1]   ;;  %v2_v6 = vld [vmem:[%s209_s0] sm:$0x1]   ;;  %s137_s24 = smov 22   ;;  %s138_s25 = smov 20  }
   0x4   :  { %4 = vst.msk [vmem:[#allocation0] sm:$0x1] %vm3_vm0, %v2_v6   ;;  %v109_v7 = vld [vmem:[%s209_s0 + $0x9] sm:$0x1]   ;;  %v110_v8 = vld [vmem:[%s209_s0 + $0x8] sm:$0x1]  }
   0x5   :  { %s139_s30 = smov 18   ;;  %s140_s2 = smov 16   ;;  %v111_v9 = vld [vmem:[%s209_s0 + $0x7] sm:$0x1]   ;;  %v112_v10 = vld [vmem:[%s209_s0 + $0x6] sm:$0x1]  }
   0x6   :  { %13 = vrot.lane.b32.xlu0 %v104_v2, %s135_s16  ;;  %25 = vrot.lane.b32.xlu1 %v106_v3, %s136_s17  ;;  %s141_s7 = smov 14   ;;  %s142_s8 = smov 12   ;;  %v113_v11 = vld [vmem:[%s209_s0 + $0x5] sm:$0x1]   ;;  %v114_v12 = vld [vmem:[%s209_s0 + $0x4] sm:$0x1]  }
   0x7   :  { %s143_s13 = smov 10   ;;  %s144_s14 = smov 8   ;;  %v115_v13 = vld [vmem:[%s209_s0 + $0x3] sm:$0x1]   ;;  %v116_v14 = vld [vmem:[%s209_s0 + $0x2] sm:$0x1]  }
   0x8   :  { %s145_s19 = smov 6   ;;  %s146_s20 = smov 4   ;;  %v117_v15 = vld [vmem:[%s209_s0 + $0x1] sm:$0x1]   ;;  %vm27_vm4 = vcmask 212160   ;;  %vm33_vm5 = vcmask 195760  }
   0x9   :  { %s147_s0 = smov 2   ;;  %vm39_vm6 = vcmask 179360   ;;  %vm45_vm7 = vcmask 162960   ;;  %vm51_vm8 = vcmask 146560   ;;  %vm57_vm9 = vcmask 130160  }
   0xa   :  { %31 = vrot.lane.b32.xlu0 %v107_v4, %s137_s24  ;;  %37 = vrot.lane.b32.xlu1 %v108_v5, %s138_s25  ;;  %vm63_vm10 = vcmask 113760   ;;  %vm69_vm11 = vcmask 97360   ;;  %vm75_vm12 = vcmask 80960   ;;  %vm81_vm13 = vcmask 64560  }
   0xb   :  { %vm87_vm14 = vcmask 48160   ;;  %vm93_vm15 = vcmask 31760  }
   0xe   :  { %43 = vrot.lane.b32.xlu0 %v109_v7, %s139_s30  ;;  %49 = vrot.lane.b32.xlu1 %v110_v8, %s140_s2 }
  0x12   :  { %55 = vrot.lane.b32.xlu0 %v111_v9, %s141_s7  ;;  %61 = vrot.lane.b32.xlu1 %v112_v10, %s142_s8 }
  0x16   :  { %67 = vrot.lane.b32.xlu0 %v113_v11, %s143_s13  ;;  %73 = vrot.lane.b32.xlu1 %v114_v12, %s144_s14 }
  0x1a   :  { %79 = vrot.lane.b32.xlu0 %v115_v13, %s145_s19  ;;  %85 = vrot.lane.b32.xlu1 %v116_v14, %s146_s20 }
  0x1e   :  { %91 = vrot.lane.b32.xlu0 %v117_v15, %s147_s0 }
  0x74   :  { %v8_v16 = vpop.permute.xlu0 %7   ;;  %v20_v17 = vpop.permute.xlu1 %19  }
  0x75   :  { %10 = vst.msk [vmem:[#allocation0] sm:$0x1] %vm9_vm1, %v8_v16  }
  0x78   :  { %v14_v18 = vpop.permute.xlu0 %13   ;;  %v26_v19 = vpop.permute.xlu1 %25  }
  0x79   :  { %16 = vst.msk [vmem:[#allocation0] sm:$0x1] %vm15_vm2, %v14_v18  }
  0x7a   :  { %22 = vst.msk [vmem:[#allocation0] sm:$0x1] %vm21_vm3, %v20_v17  }
  0x7b   :  { %28 = vst.msk [vmem:[#allocation0] sm:$0x1] %vm27_vm4, %v26_v19  }
  0x7c   :  { %v32_v20 = vpop.permute.xlu0 %31   ;;  %v38_v21 = vpop.permute.xlu1 %37  }
  0x7d   :  { %34 = vst.msk [vmem:[#allocation0] sm:$0x1] %vm33_vm5, %v32_v20  }
  0x7e   :  { %40 = vst.msk [vmem:[#allocation0] sm:$0x1] %vm39_vm6, %v38_v21  }
  0x80   :  { %v44_v22 = vpop.permute.xlu0 %43   ;;  %v50_v23 = vpop.permute.xlu1 %49  }
  0x81   :  { %46 = vst.msk [vmem:[#allocation0] sm:$0x1] %vm45_vm7, %v44_v22  }
  0x82   :  { %52 = vst.msk [vmem:[#allocation0] sm:$0x1] %vm51_vm8, %v50_v23  }
  0x84   :  { %v56_v24 = vpop.permute.xlu0 %55   ;;  %v62_v25 = vpop.permute.xlu1 %61  }
  0x85   :  { %58 = vst.msk [vmem:[#allocation0] sm:$0x1] %vm57_vm9, %v56_v24  }
  0x86   :  { %64 = vst.msk [vmem:[#allocation0] sm:$0x1] %vm63_vm10, %v62_v25  }
  0x88   :  { %v68_v26 = vpop.permute.xlu0 %67   ;;  %v74_v27 = vpop.permute.xlu1 %73  }
  0x89   :  { %70 = vst.msk [vmem:[#allocation0] sm:$0x1] %vm69_vm11, %v68_v26  }
  0x8a   :  { %76 = vst.msk [vmem:[#allocation0] sm:$0x1] %vm75_vm12, %v74_v27  }
  0x8c   :  { %v80_v28 = vpop.permute.xlu0 %79   ;;  %v86_v29 = vpop.permute.xlu1 %85  }
  0x8d   :  { %82 = vst.msk [vmem:[#allocation0] sm:$0x1] %vm81_vm13, %v80_v28  }
  0x8e   :  { %88 = vst.msk [vmem:[#allocation0] sm:$0x1] %vm87_vm14, %v86_v29  }
  0x90   :  { %v92_v30 = vpop.permute.xlu0 %91  }
  0x91   :  { %94 = vst.msk [vmem:[#allocation0] sm:$0x1] %vm93_vm15, %v92_v30  }
  0x98   :  { %v99_v31 = vld [vmem:[#allocation0] sm:$0x1] }
  0x99   :  { %102 = vst [vmem:[%s210_s1] sm:$0x1] %v99_v31 }

// kernel: rel_positional_embedding.1
= control target key start
LH: loop header
LB: loop body
LE: loop exit
PB: predicated region body
PF: predicated region fallthrough
CT: control target
= control target key end

     0   :  { %vm19_vm0 = vcmask 64512   ;;  %v658_v0 = vmov 0.0   ;;  %vm659_vm1 = vmmov 0   ;;  %v660_v45 = vmov 683565275   ;;  %s733_s1 = inlined_call_operand.vmem [shape: f32[8,128], index: 1, kind: input, shape index: {}]   ;;  %s734_s0 = inlined_call_operand.vmem [shape: f32[4,8], index: 0, kind: input, shape index: {}]   ;;  %s735_s2 = inlined_call_operand.vmem [shape: f32[1,128], index: 2, kind: input, shape index: {}]   ;;  %s736_s3 = inlined_call_operand.vmem [shape: f32[1,128], index: 3, kind: input, shape index: {}]   ;;  %s737_s4 = inlined_call_operand.vmem [shape: f32[4,128], index: 4, kind: output, shape index: {}]  }
   0x1   :  { %612 = vmatprep.subr.mxu0 %v658_v0  ;;  %v18_v1 = vld [vmem:[%s733_s1] sm:$0xff]  ;;  %617 = vmatprep.subr.mxu1 %v658_v0  ;;  %v661_v47 = vmov 2475754826   ;;  %v662_v50 = vmov 2131351028  }
   0x2   :  { %v17_v2 = vld [vmem:[%s734_s0] sm:$0xf]  ;;  %v54_v3 = vand.u32 4294901760, %v18_v1  ;;  %614 = vmatprep.mubr.msk.f32.mxu0 %vm659_vm1, %v658_v0  ;;  %619 = vmatprep.mubr.msk.f32.mxu1 %vm659_vm1, %v658_v0  ;;  %v663_v53 = vmov 2102212464  }
   0x3   :  { %v21_v4 = vsel %vm19_vm0, %v17_v2, 0  ;;  %v594_v28 = vld [vmem:[%s735_s2] ss:$0 sm:$0xff]  ;;  %v664_v56 = vmov 920167782  }
   0x4   :  { %v89_v5 = vand.u32 4294901760, %v21_v4  ;;  %613 = vmatpush3.msra.mxu0 %v54_v3  ;;  %v131_v6 = vsub.f32 %v18_v1, %v54_v3  ;;  %v595_v32 = vld [vmem:[%s736_s3] ss:$0 sm:$0xff]  ;;  %v665_v59 = vmov 1326507024  }
   0x5   :  { %622 = vmatprep.subr.mxu0 %v658_v0 }
   0x6   :  { %v90_v7 = vsub.f32 %v21_v4, %v89_v5  ;;  %v132_v8 = vand.u32 4294901760, %v131_v6 }
   0x8   :  { %v91_v9 = vand.u32 4294901760, %v90_v7  ;;  %v133_v10 = vsub.f32 %v131_v6, %v132_v8 }
   0xa   :  { %v92_v11 = vsub.f32 %v90_v7, %v91_v9  ;;  %v134_v12 = vand.u32 4294901760, %v133_v10 }
   0xc   :  { %v93_v13 = vand.u32 4294901760, %v92_v11  ;;  %618 = vmatpush3.msra.mxu1 %v134_v12 }
   0xd   :  { %620 = vmatmul.mubr.f32.vlgmr.msra.gmra.mxu1 %v89_v5  ;;  %627 = vmatprep.subr.mxu1 %v658_v0 }
   0xe   :  { %615 = vmatmul.mubr.f32.vlgmr.msra.gmra.mxu0 %v93_v13  ;;  %628 = vmatpush3.msra.mxu1 %v54_v3 }
   0xf   :  { %623 = vmatpush3.msra.mxu0 %v131_v6  ;;  %624 = vmatprep.mubr.msk.f32.mxu0 %vm659_vm1, %v658_v0 }
  0x10   :  { %629 = vmatprep.mubr.msk.f32.mxu1 %vm659_vm1, %v658_v0  ;;  %632 = vmatprep.subr.mxu0 %v658_v0 }
  0x11   :  { %630 = vmatmul.mubr.f32.vlgmr.msra.gmra.mxu1 %v91_v9  ;;  %637 = vmatprep.subr.mxu1 %v658_v0 }
  0x12   :  { %625 = vmatmul.mubr.f32.vlgmr.msra.gmra.mxu0 %v90_v7  ;;  %638 = vmatpush3.msra.mxu1 %v54_v3 }
  0x13   :  { %633 = vmatpush3.msra.mxu0 %v132_v8  ;;  %634 = vmatprep.mubr.msk.f32.mxu0 %vm659_vm1, %v658_v0 }
  0x14   :  { %639 = vmatprep.mubr.msk.f32.mxu1 %vm659_vm1, %v658_v0 }
  0x15   :  { %640 = vmatmul.mubr.f32.vlgmr.msra.gmra.mxu1 %v89_v5 }
  0x16   :  { %635 = vmatmul.mubr.f32.vlgmr.msra.gmra.mxu0 %v89_v5 }
  0xcd   :  { %v171_v15 = vpop.f32.mrf.mxu1 }
  0xce   :  { %v95_v14 = vpop.f32.mrf.mxu0 }
  0xcf   :  { %v621_v17 = vpop.f32.mrf.mxu1  ;;  %v172_v18 = vadd.f32 %v171_v15, %v95_v14 }
  0xd0   :  { %v616_v16 = vpop.f32.mrf.mxu0 }
  0xd1   :  { %v319_v20 = vpop.f32.mrf.mxu1 }
  0xd2   :  { %v245_v19 = vpop.f32.mrf.mxu0 }
  0xd3   :  { %v246_v21 = vadd.f32 %v245_v19, %v172_v18  ;;  %v631_v23 = vpop.f32.mrf.mxu1 }
  0xd4   :  { %v626_v22 = vpop.f32.mrf.mxu0 }
  0xd5   :  { %v320_v24 = vadd.f32 %v319_v20, %v246_v21  ;;  %v465_v26 = vpop.f32.mrf.mxu1 }
  0xd6   :  { %v393_v25 = vpop.f32.mrf.mxu0 }
  0xd7   :  { %v394_v27 = vadd.f32 %v393_v25, %v320_v24  ;;  %v641_v30 = vpop.f32.mrf.mxu1 }
  0xd8   :  { %v636_v29 = vpop.f32.mrf.mxu0 }
  0xd9   :  { %v466_v31 = vadd.f32 %v465_v26, %v394_v27 }
  0xdb   :  { %v476_v33 = vmul.f32 %v594_v28, %v466_v31 }
  0xdd   :  { %v709_v34 = vadd.f32 %v595_v32, %v476_v33 }
  0xdf   :  { %v488_v35 = vand.u32 2139095040, %v709_v34  ;;  %v485_v39 = vand.u32 2147483647, %v709_v34  ;;  %vm487_vm9 = vcmp.lt.s32.totalorder %v709_v34, 0  ;;  %vm577_vm14 = vweird.f32 %v709_v34 }
  0xe1   :  { %v489_v36 = vshrl.u32 %v488_v35, 23  ;;  %v492_v42 = vand.u32 8388607, %v485_v39  ;;  %vm486_vm10 = vcmp.le.f32.partialorder %v485_v39, 0.7853982 }
  0xe3   :  { %v596_v37 = vadd.s32 4294967169, %v489_v36  ;;  %v493_v61 = vor.u32 8388608, %v492_v42 }
  0xe5   :  { %v495_v38 = vadd.s32 1, %v596_v37  ;;  %v533_v11 = vshll.u32 %v493_v61, 8 }
  0xe7   :  { %vm496_vm2 = vcmp.gt.s32.totalorder %v495_v38, 0 }
  0xe8   :  { %v497_v40 = vsel %vm496_vm2, %v495_v38, 0 }
  0xe9   :  { %v499_v41 = vand.u32 31, %v497_v40  ;;  %v498_v44 = vshrl.u32 %v497_v40, 5 }
  0xeb   :  { %v500_v43 = vsub.s32 32, %v499_v41  ;;  %v502_v46 = vshll.u32 %v660_v45, %v499_v41  ;;  %v505_v48 = vshll.u32 %v661_v47, %v499_v41  ;;  %v508_v52 = vshll.u32 %v662_v50, %v499_v41 }
  0xec   :  { %v511_v55 = vshll.u32 %v663_v53, %v499_v41  ;;  %v514_v58 = vshll.u32 %v664_v56, %v499_v41  ;;  %vm517_vm3 = vcmp.lt.s32.totalorder %v498_v44, 1  ;;  %vm520_vm4 = vcmp.lt.s32.totalorder %v498_v44, 4 }
  0xed   :  { %v503_v49 = vshrl.u32 %v661_v47, %v500_v43  ;;  %v506_v51 = vshrl.u32 %v662_v50, %v500_v43  ;;  %v509_v54 = vshrl.u32 %v663_v53, %v500_v43  ;;  %v512_v57 = vshrl.u32 %v664_v56, %v500_v43 }
  0xee   :  { %v515_v60 = vshrl.u32 %v665_v59, %v500_v43  ;;  %v501_v6 = vshrl.u32 %v660_v45, %v500_v43  ;;  %vm519_vm5 = vcmp.lt.s32.totalorder %v498_v44, 3  ;;  %vm518_vm6 = vcmp.lt.s32.totalorder %v498_v44, 2 }
  0xef   :  { %v504_v62 = vor.u32 %v503_v49, %v502_v46  ;;  %v507_v63 = vor.u32 %v506_v51, %v505_v48  ;;  %v510_v0 = vor.u32 %v509_v54, %v508_v52  ;;  %v513_v1 = vor.u32 %v512_v57, %v511_v55 }
  0xf0   :  { %v516_v2 = vor.u32 %v515_v60, %v514_v58 }
  0xf1   :  { %v522_v3 = vsel %vm520_vm4, %v510_v0, 2102212464  ;;  %v525_v4 = vsel %vm517_vm3, %v504_v62, %v507_v63  ;;  %v529_v5 = vsel %vm517_vm3, %v507_v63, %v510_v0  ;;  %v526_v7 = vsel %vm520_vm4, %v513_v1, 920167782 }
  0xf2   :  { %v530_v8 = vsel %vm520_vm4, %v516_v2, 1326507024  ;;  %v527_v9 = vsel %vm519_vm5, %v510_v0, %v526_v7  ;;  %v521_v12 = vsel %vm517_vm3, %v501_v6, %v504_v62  ;;  %v523_v13 = vsel %vm519_vm5, %v507_v63, %v522_v3 }
  0xf3   :  { %v531_v10 = vsel %vm519_vm5, %v513_v1, %v530_v8  ;;  %v528_v14 = vsel %vm518_vm6, %v525_v4, %v527_v9  ;;  %v524_v20 = vsel %vm518_vm6, %v521_v12, %v523_v13 }
  0xf4   :  { %v532_v15 = vsel %vm518_vm6, %v529_v5, %v531_v10  ;;  %v718_v18 = vmul.u32.u64.low %v533_v11, %v528_v14  ;;  %v719_v19 = vmul.u32.u64.high %v533_v11, %v528_v14, %v718_v18  ;;  %v540_v22 = vmul.u32 %v533_v11, %v524_v20 }
  0xf5   :  { %v715_v16 = vmul.u32.u64.low %v533_v11, %v532_v15  ;;  %v716_v17 = vmul.u32.u64.high %v533_v11, %v532_v15, %v715_v16 }
  0xf6   :  { %v543_v21 = vadd.s32 1, %v719_v19 }
  0xf7   :  { %vm542_vm7 = vc.u32 %v716_v17, %v718_v18  ;;  %v541_v35 = vadd.s32 %v718_v18, %v716_v17 }
  0xf8   :  { %v544_v23 = vsel %vm542_vm7, %v543_v21, %v719_v19 }
  0xf9   :  { %v545_v24 = vadd.s32 %v544_v23, %v540_v22 }
  0xfb   :  { %v546_v25 = vadd.s32 536870912, %v545_v24 }
  0xfd   :  { %v547_v26 = vshrl.u32 %v546_v25, 30 }
  0xff   :  { %v548_v27 = vshll.u32 %v547_v26, 30  ;;  %v571_v49 = vsub.s32 4, %v547_v26 }
 0x101   :  { %v549_v28 = vsub.s32 %v545_v24, %v548_v27  ;;  %v572_v52 = vsel %vm487_vm9, %v571_v49, %v547_v26 }
 0x102   :  { %v574_v53 = vsel %vm486_vm10, 0, %v572_v52 }
 0x103   :  { %v551_v29 = vsub.s32 0, %v549_v28  ;;  %v578_v54 = vadd.s32 3, %v574_v53 }
 0x105   :  { %v597_v30 = vmin.u32 %v551_v29, %v549_v28  ;;  %v579_v55 = vand.u32 3, %v578_v54 }
 0x107   :  { %v553_v31 = vclz %v597_v30  ;;  %vm584_vm11 = vcmp.eq.s32.totalorder %v579_v55, 2  ;;  %vm581_vm12 = vcmp.eq.s32.totalorder %v579_v55, 0  ;;  %vm580_vm13 = vcmp.lt.s32.totalorder %v579_v55, 2 }
 0x109   :  { %v598_v32 = vadd.s32 4294967294, %v553_v31 }
 0x10b   :  { %vm599_vm8 = vcmp.lt.s32.totalorder %v598_v32, 0 }
 0x10c   :  { %v556_v33 = vsel %vm599_vm8, 0, %v598_v32 }
 0x10d   :  { %v557_v36 = vsub.s32 32, %v556_v33  ;;  %v561_v37 = vsub.s32 4294967266, %v556_v33  ;;  %v558_v38 = vshll.u32 %v549_v28, %v556_v33 }
 0x10f   :  { %v559_v40 = vshrl.u32 %v541_v35, %v557_v36  ;;  %v562_v41 = vadd.s32 127, %v561_v37 }
 0x111   :  { %v560_v42 = vor.u32 %v559_v40, %v558_v38  ;;  %v563_v43 = vshll.u32 %v562_v41, 23 }
 0x113   :  { %v564_v44 = vor.u32 4788187, %v563_v43  ;;  %v567_v46 = vcvt.s32.f32 %v560_v42 }
 0x115   :  { %v565_v45 = vand.u32 2147483647, %v564_v44 }
 0x117   :  { %v568_v47 = vmul.f32 %v567_v46, %v565_v45 }
 0x119   :  { %v569_v48 = vxor.u32 2147483648, %v568_v47 }
 0x11b   :  { %v570_v50 = vsel %vm487_vm9, %v569_v48, %v568_v47 }
 0x11c   :  { %v573_v51 = vsel %vm486_vm10, %v709_v34, %v570_v50 }
 0x11d   :  { %654 = vcosq.f32 %v573_v51 }
 0x11e   :  { %656 = vsinq.f32 %v573_v51 }
 0x12a   :  { %v655_v56 = vpop.eup %654 }
 0x12b   :  { %v657_v57 = vpop.eup %656  ;;  %v585_v58 = vxor.u32 2147483648, %v655_v56 }
 0x12c   :  { %v582_v59 = vxor.u32 2147483648, %v657_v57 }
 0x12d   :  { %v586_v60 = vsel %vm584_vm11, %v585_v58, %v657_v57 }
 0x12e   :  { %v583_v61 = vsel %vm581_vm12, %v655_v56, %v582_v59 }
 0x12f   :  { %v587_v39 = vsel %vm580_vm13, %v583_v61, %v586_v60 }
 0x130   :  { %v588_v62 = vsel %vm577_vm14, nan, %v587_v39 }
 0x131   :  { %589 = vst [vmem:[%s737_s4] sm:$0xf] %v588_v62 }

</bundles_post_ra>
